<compile_context>
chip_gen: v5e
topology: v5e:2x2
jax: 0.10.0
libtpu: 0.0.40
codegen_flags: <defaults>
</compile_context>

<pallas_src>
import functools

import jax
import jax.numpy as jnp
from jax import lax
from jax.experimental import pallas as pl
from jax.experimental.pallas import tpu as pltpu

_LANE = 128


def _round_up(x, m):
    return ((x + m - 1) // m) * m


def _vmem_capacity_bytes():
    """Physical VMEM per TensorCore; conservative 64 MiB (v7x-sized) fallback."""
    try:
        if jax.devices()[0].platform == "tpu":
            cap = int(pltpu.get_tpu_info().vmem_capacity_bytes)
            if cap > 0:
                return cap
    except Exception:
        pass
    return 64 * 1024 * 1024


def _choose_tiles(B, L, C_pad, HW_pad, itemsize, out_itemsize, budget,
                  prefer_split_batch, use_acc):
    """Jointly pick (bblk, hw_tile) maximizing the feature-map block bytes."""
    if HW_pad % _LANE == 0:
        hw_cands = [t for t in range(_LANE, HW_pad + 1, _LANE) if HW_pad % t == 0]
    else:
        hw_cands = [HW_pad]                      # full extent is a legal block dim

    max_bblk = B
    if prefer_split_batch and B >= 2:            # keep >= 2 batch grid steps (v7x: 2 TCs)
        max_bblk = max(1, B // 2)
    max_bblk = min(max_bblk, 8)                  # bound batched-einsum unroll / vreg pressure
    b_cands = [d for d in range(1, max_bblk + 1) if B % d == 0]

    def vmem_use(bblk, hw_t):
        fm = 2 * bblk * C_pad * hw_t * itemsize          # double-buffered fm tile
        vt = 2 * bblk * L * C_pad * itemsize             # double-buffered tokens
        out = 2 * bblk * L * C_pad * out_itemsize        # double-buffered output
        w = 2 * C_pad * C_pad * itemsize                 # resident weight
        wr = bblk * L * C_pad * itemsize                 # cached w_r scratch
        acc = bblk * L * C_pad * 4 if use_acc else 0     # f32 accumulator
        tmp = 4 * bblk * L * hw_t * 4                    # softmax intermediates / slack
        return fm + vt + out + w + wr + acc + tmp

    best = None
    for bblk in b_cands:
        for hw_t in hw_cands:
            if vmem_use(bblk, hw_t) > budget:
                continue
            # maximize fm block bytes; tie-break longer DMA runs, then fewer steps
            key = (bblk * C_pad * hw_t * itemsize, hw_t, bblk)
            if best is None or key > best[0]:
                best = (key, bblk, hw_t)
    if best is None:
        return 1, min(hw_cands)
    return best[1], best[2]


def _recurrent_token_kernel(fm_ref, vt_ref, w_ref, out_ref, wr_ref, *acc_scratch,
                            use_acc):
    # fm_ref : (bblk, C, hw_tile)   feature-map tile (input dtype)
    # vt_ref : (bblk, L, C)         incoming visual tokens (input dtype)
    # w_ref  : (C, C)               linear weight (out_features, in_features)
    # out_ref: (bblk, L, C)         output, resident across the hw grid axis
    # wr_ref : (bblk, L, C)         cached w_r = vt @ W^T
    # acc_scratch: optional f32 accumulator (only when out dtype != float32)
    k = pl.program_id(1)
    acc_ref = acc_scratch[0] if use_acc else out_ref
    bblk, L, C = vt_ref.shape

    @pl.when(k == 0)
    def _init():
        acc_ref[...] = jnp.zeros_like(acc_ref)
        # nn.Linear without bias: x @ W^T.  One fused (bblk*L, C) x (C, C) MXU
        # matmul instead of bblk tiny L-row matmuls (better MXU row fill).
        vt2 = vt_ref[...].reshape(bblk * L, C)
        wr = lax.dot_general(vt2, w_ref[...], (((1,), (1,)), ((), ())),
                             preferred_element_type=jnp.float32)
        wr_ref[...] = wr.reshape(bblk, L, C).astype(wr_ref.dtype)

    fm = fm_ref[...]                                            # (bblk, C, hw)
    logits = jnp.einsum("blc,bcs->bls", wr_ref[...], fm,
                        preferred_element_type=jnp.float32)     # (bblk, L, hw)

    # Softmax over the TOKEN axis (dim=1 of (B, L, HW)); independent per spatial
    # position, so there is no carry across hw tiles.  Exact divide (no approx
    # reciprocal) so the probabilities match the reference.
    m = jnp.max(logits, axis=1, keepdims=True)
    e = jnp.exp(logits - m)
    denom = jnp.sum(e, axis=1, keepdims=True)
    t = e / denom

    # t @ fm^T without materializing a transpose: contract over the hw axis.
    upd = jnp.einsum("bls,bcs->blc", t.astype(fm.dtype), fm,
                     preferred_element_type=jnp.float32)        # (bblk, L, C)
    acc_ref[...] = acc_ref[...] + upd.astype(acc_ref.dtype)

    if use_acc:
        @pl.when(k == pl.num_programs(1) - 1)
        def _finalize():
            out_ref[...] = acc_ref[...].astype(out_ref.dtype)


def recurrent_token_layer(feature_map, visual_token_in, weight):
    """feature_map: (B, C, HW), visual_token_in: (B, L, C), weight: (C, C) -> (B, L, C)."""
    B, C, HW = feature_map.shape
    _, L, _ = visual_token_in.shape
    out_dtype = feature_map.dtype
    itemsize = jnp.dtype(feature_map.dtype).itemsize
    out_itemsize = jnp.dtype(out_dtype).itemsize
    use_acc = out_dtype != jnp.float32

    capacity = _vmem_capacity_bytes()
    budget = int(capacity * 3 // 4)     # ~48 MiB on v7x (64 MiB), ~96 MiB on v5e/v6e (128 MiB)
    prefer_split_batch = capacity <= 64 * 1024 * 1024   # v7x proxy: 64 MiB VMEM <=> 2 TCs/chip

    # Channel padding: only up to the dtype sublane multiple (8 for f32, 16 for
    # bf16) -- never to 128.  Zero padding is exact (padded W rows/cols and fm
    # channels contribute zeros); all C-dim blocks span the full padded extent.
    sublane = max(1, 32 // itemsize)
    C_pad = _round_up(C, sublane)
    if C_pad != C:
        dc = C_pad - C
        feature_map = jnp.pad(feature_map, ((0, 0), (0, dc), (0, 0)))
        visual_token_in = jnp.pad(visual_token_in, ((0, 0), (0, 0), (0, dc)))
        weight = jnp.pad(weight, ((0, dc), (0, dc)))

    # Spatial padding: only when HW is not lane-aligned AND a full-extent spatial
    # block would eat too much VMEM (zero spatial columns contribute exactly 0).
    HW_pad = HW
    if HW % _LANE != 0 and 2 * C_pad * HW * itemsize > budget // 4:
        HW_pad = _round_up(HW, _LANE)
        feature_map = jnp.pad(feature_map, ((0, 0), (0, 0), (0, HW_pad - HW)))

    bblk, hw_tile = _choose_tiles(B, L, C_pad, HW_pad, itemsize, out_itemsize,
                                  budget, prefer_split_batch, use_acc)
    grid = (B // bblk, HW_pad // hw_tile)

    cost = pl.CostEstimate(
        flops=int(2 * B * L * C_pad * (C_pad + 2 * HW_pad)),
        transcendentals=int(B * L * HW_pad),
        bytes_accessed=int((B * (C_pad * HW_pad + L * C_pad) + C_pad * C_pad) * itemsize
                           + B * L * C_pad * out_itemsize),
    )

    scratch_shapes = [pltpu.VMEM((bblk, L, C_pad), feature_map.dtype)]   # cached w_r
    if use_acc:
        scratch_shapes.append(pltpu.VMEM((bblk, L, C_pad), jnp.float32))

    kernel = functools.partial(_recurrent_token_kernel, use_acc=use_acc)

    # NOTE: if accuracy budget allows, casting feature_map / visual_token_in to
    # bfloat16 here roughly halves the dominant HBM stream on v6e/v7x (softmax
    # and accumulation stay f32 inside the kernel).  Left at the input dtype.
    out = pl.pallas_call(
        kernel,
        out_shape=jax.ShapeDtypeStruct((B, L, C_pad), out_dtype),
        grid=grid,
        in_specs=[
            pl.BlockSpec((bblk, C_pad, hw_tile), lambda b, k: (b, 0, k)),
            pl.BlockSpec((bblk, L, C_pad), lambda b, k: (b, 0, 0)),
            pl.BlockSpec((C_pad, C_pad), lambda b, k: (0, 0)),
        ],
        out_specs=pl.BlockSpec((bblk, L, C_pad), lambda b, k: (b, 0, 0)),
        scratch_shapes=scratch_shapes,
        compiler_params=pltpu.CompilerParams(
            dimension_semantics=("parallel", "arbitrary"),
            vmem_limit_bytes=int(budget),
        ),
        cost_estimate=cost,
    )(feature_map, visual_token_in, weight)

    if C_pad != C:
        out = out[:, :, :C]
    return out


def _reference(feature_map, visual_token_in, weight):
    # Pure-JAX reference mirroring the PyTorch forward.
    w_r = jnp.einsum("blc,oc->blo", visual_token_in, weight)          # Linear, no bias
    logits = jnp.einsum("blc,bcs->bls", w_r, feature_map)             # (B, L, HW)
    t = jax.nn.softmax(logits, axis=1)                                # softmax over tokens
    return jnp.einsum("bls,bcs->blc", t, feature_map)                 # (B, L, C)


if __name__ == "__main__":
    B, C, L, H, W = 2, 32, 8, 16, 16
    HW = H * W

    key = jax.random.PRNGKey(0)
    k_fm, k_vt, k_w = jax.random.split(key, 3)

    # Moderate input scale keeps exp(logits) well conditioned so the kernel and
    # the XLA reference agree tightly under the platform's default matmul precision.
    feature_map = 0.5 * jax.random.normal(k_fm, (B, C, HW), dtype=jnp.float32)
    visual_token_in = 0.5 * jax.random.normal(k_vt, (B, L, C), dtype=jnp.float32)

    # Deterministic Xavier-uniform init for the (C, C) linear weight.
    bound = (6.0 / (C + C)) ** 0.5
    weight = jax.random.uniform(
        k_w, (C, C), dtype=jnp.float32, minval=-bound, maxval=bound
    )

    out = recurrent_token_layer(feature_map, visual_token_in, weight)
    out = jax.block_until_ready(out)

    ref = _reference(feature_map, visual_token_in, weight)
    assert out.shape == (B, L, C)
    max_diff = float(jnp.max(jnp.abs(out - ref)))
    assert jnp.allclose(out, ref, atol=2e-2, rtol=2e-2), (
        f"mismatch vs reference (max abs diff {max_diff})"
    )

    print("KERNEL_OK")
</pallas_src>

<mosaic_0001>
module attributes {stable_mosaic.version = 11 : i64} {
  func.func @_recurrent_token_kernel(%arg0: i32, %arg1: i32, %arg2: memref<1x32x256xf32, #tpu.memory_space<vmem>>, %arg3: memref<1x8x32xf32, #tpu.memory_space<vmem>>, %arg4: memref<32x32xf32, #tpu.memory_space<vmem>>, %arg5: memref<1x8x32xf32, #tpu.memory_space<vmem>>, %arg6: memref<1x8x32xf32, #tpu.memory_space<vmem>>) attributes {dimension_semantics = [#tpu.dimension_semantics<parallel>, #tpu.dimension_semantics<arbitrary>], iteration_bounds = array<i64: 2, 1>, scalar_prefetch = 0 : i64, scratch_operands = 1 : i64, tpu.core_type = #tpu.core_type<tc>, window_params = [{transform_indices = @transform_0, window_bounds = array<i64: 1, 32, 256>}, {transform_indices = @transform_1, window_bounds = array<i64: 1, 8, 32>}, {pipeline_mode = #tpu.pipeline_mode<synchronous>, transform_indices = @transform_2, window_bounds = array<i64: 32, 32>}, {transform_indices = @transform_3, window_bounds = array<i64: 1, 8, 32>}]} {
    %c0_i32 = arith.constant 0 : i32
    %0 = arith.cmpi eq, %arg1, %c0_i32 : i32
    %1 = arith.extui %0 : i1 to i32
    %c0_i32_0 = arith.constant 0 : i32
    %2 = arith.cmpi ne, %1, %c0_i32_0 : i32
    scf.if %2 {
      %cst_15 = arith.constant 0.000000e+00 : f32
      %19 = vector.broadcast %cst_15 : f32 to vector<1x8x32xf32>
      %c0_16 = arith.constant 0 : index
      %c0_17 = arith.constant 0 : index
      %c0_18 = arith.constant 0 : index
      %20 = vector.load %arg5[%c0_16, %c0_17, %c0_18] : memref<1x8x32xf32, #tpu.memory_space<vmem>>, vector<1x8x32xf32>
      tpu.vector_store %arg5[%c0_16, %c0_17, %c0_18], %19 {strides = array<i32>} : memref<1x8x32xf32, #tpu.memory_space<vmem>>, vector<1x8x32xf32>,
      %c0_19 = arith.constant 0 : index
      %c0_20 = arith.constant 0 : index
      %c0_21 = arith.constant 0 : index
      %21 = vector.load %arg3[%c0_19, %c0_20, %c0_21] : memref<1x8x32xf32, #tpu.memory_space<vmem>>, vector<1x8x32xf32>
      %22 = vector.shape_cast %21 : vector<1x8x32xf32> to vector<8x32xf32>
      %c0_22 = arith.constant 0 : index
      %c0_23 = arith.constant 0 : index
      %23 = vector.load %arg4[%c0_22, %c0_23] : memref<32x32xf32, #tpu.memory_space<vmem>>, vector<32x32xf32>
      %cst_24 = arith.constant dense<0.000000e+00> : vector<8x32xf32>
      %24 = tpu.matmul %22, %23, %cst_24 {dimension_numbers = #tpu.dot_dimension_numbers<[1], [1], [0], [0], [0, 0, 1, 0], [], []>} : vector<8x32xf32>, vector<32x32xf32>, vector<8x32xf32> -> vector<8x32xf32>
      %25 = vector.shape_cast %24 : vector<8x32xf32> to vector<1x8x32xf32>
      %c0_25 = arith.constant 0 : index
      %c0_26 = arith.constant 0 : index
      %c0_27 = arith.constant 0 : index
      %26 = vector.load %arg6[%c0_25, %c0_26, %c0_27] : memref<1x8x32xf32, #tpu.memory_space<vmem>>, vector<1x8x32xf32>
      tpu.vector_store %arg6[%c0_25, %c0_26, %c0_27], %25 {strides = array<i32>} : memref<1x8x32xf32, #tpu.memory_space<vmem>>, vector<1x8x32xf32>,
    } else {
    }
    %c0 = arith.constant 0 : index
    %c0_1 = arith.constant 0 : index
    %c0_2 = arith.constant 0 : index
    %3 = vector.load %arg2[%c0, %c0_1, %c0_2] : memref<1x32x256xf32, #tpu.memory_space<vmem>>, vector<1x32x256xf32>
    %c0_3 = arith.constant 0 : index
    %c0_4 = arith.constant 0 : index
    %c0_5 = arith.constant 0 : index
    %4 = vector.load %arg6[%c0_3, %c0_4, %c0_5] : memref<1x8x32xf32, #tpu.memory_space<vmem>>, vector<1x8x32xf32>
    "tpu.trace_start"() <{level = 10 : i32, message = "blc,bcs->bls"}> : () -> ()
    %cst = arith.constant dense<0.000000e+00> : vector<1x8x256xf32>
    %5 = tpu.matmul %4, %3, %cst {dimension_numbers = #tpu.dot_dimension_numbers<[2], [1], [1], [2], [0, 0, 0, 1, 1, 2], [0], [0]>} : vector<1x8x32xf32>, vector<1x32x256xf32>, vector<1x8x256xf32> -> vector<1x8x256xf32>
    "tpu.trace_stop"() : () -> ()
    %cst_6 = arith.constant dense<0xFF800000> : vector<1x256xf32>
    %6 = vector.multi_reduction <maximumf>, %5, %cst_6 [1] : vector<1x8x256xf32> to vector<1x256xf32>
    %7 = vector.shape_cast %6 : vector<1x256xf32> to vector<1x1x256xf32>
    %8 = vector.broadcast %7 : vector<1x1x256xf32> to vector<1x8x256xf32>
    %9 = arith.subf %5, %8 : vector<1x8x256xf32>
    %10 = math.exp %9 : vector<1x8x256xf32>
    %cst_7 = arith.constant dense<0.000000e+00> : vector<1x256xf32>
    %11 = vector.multi_reduction <add>, %10, %cst_7 [1] : vector<1x8x256xf32> to vector<1x256xf32>
    %12 = vector.shape_cast %11 : vector<1x256xf32> to vector<1x1x256xf32>
    %13 = vector.broadcast %12 : vector<1x1x256xf32> to vector<1x8x256xf32>
    %14 = arith.divf %10, %13 : vector<1x8x256xf32>
    "tpu.trace_start"() <{level = 10 : i32, message = "bls,bcs->blc"}> : () -> ()
    %cst_8 = arith.constant dense<0.000000e+00> : vector<1x8x32xf32>
    %15 = tpu.matmul %14, %3, %cst_8 {dimension_numbers = #tpu.dot_dimension_numbers<[2], [2], [1], [1], [0, 0, 0, 1, 1, 1], [0], [0]>} : vector<1x8x256xf32>, vector<1x32x256xf32>, vector<1x8x32xf32> -> vector<1x8x32xf32>
    "tpu.trace_stop"() : () -> ()
    %c0_9 = arith.constant 0 : index
    %c0_10 = arith.constant 0 : index
    %c0_11 = arith.constant 0 : index
    %16 = vector.load %arg5[%c0_9, %c0_10, %c0_11] : memref<1x8x32xf32, #tpu.memory_space<vmem>>, vector<1x8x32xf32>
    %17 = arith.addf %16, %15 : vector<1x8x32xf32>
    %c0_12 = arith.constant 0 : index
    %c0_13 = arith.constant 0 : index
    %c0_14 = arith.constant 0 : index
    %18 = vector.load %arg5[%c0_12, %c0_13, %c0_14] : memref<1x8x32xf32, #tpu.memory_space<vmem>>, vector<1x8x32xf32>
    tpu.vector_store %arg5[%c0_12, %c0_13, %c0_14], %17 {strides = array<i32>} : memref<1x8x32xf32, #tpu.memory_space<vmem>>, vector<1x8x32xf32>,
    return
  }
  func.func @transform_0(%arg0: i32, %arg1: i32) -> (i32, i32, i32) {
    %c0_i32 = arith.constant 0 : i32
    %c0_i32_0 = arith.constant 0 : i32
    return %arg0, %c0_i32, %arg1 : i32, i32, i32
  }
  func.func @transform_1(%arg0: i32, %arg1: i32) -> (i32, i32, i32) {
    %c0_i32 = arith.constant 0 : i32
    %c0_i32_0 = arith.constant 0 : i32
    %c0_i32_1 = arith.constant 0 : i32
    return %arg0, %c0_i32, %c0_i32_0 : i32, i32, i32
  }
  func.func @transform_2(%arg0: i32, %arg1: i32) -> (i32, i32) {
    %c0_i32 = arith.constant 0 : i32
    %c0_i32_0 = arith.constant 0 : i32
    %c0_i32_1 = arith.constant 0 : i32
    return %c0_i32, %c0_i32_0 : i32, i32
  }
  func.func @transform_3(%arg0: i32, %arg1: i32) -> (i32, i32, i32) {
    %c0_i32 = arith.constant 0 : i32
    %c0_i32_0 = arith.constant 0 : i32
    %c0_i32_1 = arith.constant 0 : i32
    return %arg0, %c0_i32, %c0_i32_0 : i32, i32, i32
  }
}

</mosaic_0001>

<bundles_post_ra>
// kernel: tpu_custom_call.1
= control target key start
LH: loop header
LB: loop body
LE: loop exit
PB: predicated region body
PF: predicated region fallthrough
CT: control target
= control target key end

     0   :  { %s1109_s0 = inlined_call_operand.hbm [shape: f32[2,32,256], index: 0, kind: input, shape index: {}]   ;;  %s1110_s1 = inlined_call_operand.hbm [shape: f32[2,8,32], index: 1, kind: input, shape index: {}]   ;;  %s1111_s2 = inlined_call_operand.hbm [shape: f32[32,32], index: 2, kind: input, shape index: {}]   ;;  %s1112_s3 = inlined_call_operand.hbm [shape: f32[2,8,32], index: 3, kind: output, shape index: {}]  }
   0x1   :  { %1114 = sst [smem:[#allocation15_spill]] %s1109_s0 }
   0x2   :  { %1115 = sst [smem:[#allocation16_spill]] %s1111_s2 }
   0x3   :  { %8 = vsyncpa [#allocation4], 0 }
   0x4   :  { %10 = vsyncpa [#allocation4 + $0x1], 0 }
   0x5   :  { %11 = vsyncpa [#allocation7], 0 }
   0x6   :  { %13 = vsyncpa [#allocation7 + $0x1], 0 }
   0x7   :  { %14 = vsyncpa [#allocation5], 0 }
   0x8   :  { %16 = vsyncpa [#allocation5 + $0x1], 0  ;;  %s921_s12 = smov 0   ;;  %s923_s13 = smov 0  }
   0x9   :  { %s925_s14 = smov 0   ;;  %s927_s15 = smov 0  }
   0xa   :  { %s929_s16 = smov 0   ;;  %s931_s17 = smov 0  }
   0xb LB: > { %s952_s18 = sadd.s32 4294967295, %s893_s17   ;;  %s596_s19 = sadd.s32 4294967294, %s893_s17   ;;  %s893_s17 = sphi %s931_s17, %s22_s17   ;;  %s889_s16 = sphi %s929_s16, %s1130_s16   ;;  %s885_s15 = sphi %s927_s15, %s1129_s15   ;;  %s881_s14 = sphi %s925_s14, %s1128_s14   ;;  %s877_s13 = sphi %s923_s13, %s1127_s13   ;;  %s873_s12 = sphi %s921_s12, %s1126_s12  }
   0xc   : > { %p56_p0 = scmp.ne.s32.totalorder %s877_s13, %s873_s12  ;;  %p57_p1 = scmp.eq.s32.totalorder %s952_s18, 0 }
   0xd   : > { %p127_p2 = scmp.eq.s32.totalorder %s952_s18, 1  ;;  %p133_p3 = scmp.eq.s32.totalorder %s596_s19, 1 }
   0xe   : > { %p961_p4 = por %p57_p1, %p56_p0  ;;  %p597_p5 = scmp.ge.s32.totalorder %s893_s17, 1 }
   0xf   : > { %p966_p6 = por %p133_p3, %p56_p0  ;;  %p140_p7 = scmp.lt.s32.totalorder %s893_s17, 3 }
  0x10   : > { %s1118_s2 = sld [smem:[#allocation16_spill]]  ;;  %s895_s26 = smov [#allocation8]  }
  0x11   : > { %p974_p8 = pnand %p597_p5, %p140_p7  ;;  %s153_s27 = sshll.u32 %s895_s26, 4  ;;  %s154_s27 = int_to_ptr.vmem [resolvable:$true] %s153_s27 }
  0x12   : > { %p599_p11 = scmp.ge.s32.totalorder %s893_s17, 2  ;;  %s896_s28 = smov 128  }
  0x13   : > { %p632_p9 = pneg %p974_p8  ;;  %s897_s29 = smov 8  }
  0x14   : > { %s34_s30 = sadd.s32 1, %s889_s16  ;;  %s43_s4 = sadd.s32 1, %s881_s14 }
  0x15   : > { %p633_p10 = pnand %p632_p9, %p57_p1  ;;  %p36_p12 = scmp.ge.s32.totalorder %s34_s30, 2 }
  0x16   : > { %s151_s24 = sshll.u32 %s1118_s2, 4  ;;  %p50_p13 = scmp.ne.s32.totalorder %s881_s14, %s877_s13  ;;  %s152_s24 = int_to_ptr.hbm [resolvable:$true] %s151_s24 }
  0x17   : > { %635 = dma.hbm_to_vmem [thread:$0]  (!%p633_p10), %s152_s24, 512, %s154_s27, [#allocation7], %s896_s28, %s896_s28, %s897_s29  }
  0x18   : > { %p51_p0 = scmp.eq.s32.totalorder %s893_s17, 0  ;;  %s1132_s30 = smov (%p36_p12, %s34_s30), 0 }
  0x19   : > { %1120 = sst [smem:[#allocation14_spill]] %s1132_s30  ;;  %p996_p5 = por %p127_p2, %p50_p13 }
  0x1a   : > { %p990_p3 = por %p51_p0, %p50_p13  ;;  %s38_s7 = ssub.s32 %s889_s16, %s1132_s30 }
  0x1b   : > { %p648_p7 = scmp.lt.s32.totalorder %s893_s17, 2  ;;  %p41_p9 = scmp.eq.s32.totalorder %s38_s7, 0 }
  0x1c   : > { %s167_s8 = sand.u32 1, %s881_s14   ;;  %s621_s11 = sshll.u32 %s889_s16, 6 }
  0x1d   : > { %s600_s9 = sshll.u32 %s167_s8, 6  ;;  %s1123_s0 = sld [smem:[#allocation15_spill]] }
  0x1e   : > { %s1005_s10 = scalar_select %p41_p9, %s881_s14, %s43_s4  }
  0x1f   : > { %s171_s24 = scalar_lea.vmem [#allocation3], %s600_s9  ;;  %p1013_p2 = pnand %p648_p7, %p990_p3 }
  0x20   : > { %s181_s26 = sshll.u32 %s171_s24, 4  ;;  %s191_s29 = sand.u32 1, %s893_s17   ;;  %s182_s26 = int_to_ptr.vmem [resolvable:$true] %s181_s26 }
  0x21   : > { %s168_s4 = scalar_lea.sflag [#allocation4], %s167_s8  ;;  %s898_s7 = smov 256  }
  0x22   : > { %s899_s2 = smov 16   ;;  %s603_s19 = sshll.u32 %s167_s8, 3 }
  0x23   : > { %s178_s23 = scalar_lea.hbm %s1123_s0, %s621_s11  ;;  %s604_s11 = sshll.u32 %s889_s16, 3 }
  0x24   : > { %s179_s27 = sshll.u32 %s178_s23, 4  ;;  %s199_s23 = scalar_lea.hbm %s1110_s1, %s604_s11  ;;  %s180_s27 = int_to_ptr.hbm [resolvable:$true] %s179_s27 }
  0x25   : > { %639 = dma.hbm_to_vmem [thread:$0]  (!%p1013_p2), %s180_s27, 1024, %s182_s26, %s168_s4, %s898_s7, %s898_s7, %s899_s2  }
  0x26   : > { %s195_s24 = scalar_lea.vmem [#allocation6], %s603_s19  ;;  %s201_s0 = sshll.u32 %s199_s23, 4  ;;  %s202_s0 = int_to_ptr.hbm [resolvable:$true] %s201_s0 }
  0x27   : > { %s203_s5 = sshll.u32 %s195_s24, 4  ;;  %s192_s30 = scalar_lea.sflag [#allocation7], %s191_s29  ;;  %s204_s5 = int_to_ptr.vmem [resolvable:$true] %s203_s5 }
  0x28   : > { %642 = dma.hbm_to_vmem [thread:$0]  (!%p1013_p2), %s202_s0, 128, %s204_s5, %s192_s30  }
  0x29   : > { %212 = sbr.rel (%p974_p8) target bundleno = 529 (0x211), region = 32  ;;  %s1029_s2 = sand.u32 (!%p974_p8), 1, %s877_s13  }
  0x2a   : > { %s606_s8 = sshll.u32 (!%p974_p8), %s1029_s2, 6  ;;  %s215_s26 = scalar_lea.sflag (!%p974_p8), [#allocation4], %s1029_s2 }
  0x2b   : > { %s1033_s27 = scalar_lea.vmem (!%p974_p8), [#allocation3], %s606_s8 }
  0x2e   : > { %856 = dma.done.wait (%p961_p4), %s215_s26, 1024  }
  0x2f   : > { %858 = vsyncadd (%p961_p4), %s215_s26, 4294966272  ;;  %s224_s0 = sand.u32 1, %s952_s18   ;;  %s607_s25 = sshll.u32 %s1029_s2, 3 }
  0x30   : > { %s225_s30 = scalar_lea.sflag [#allocation7], %s224_s0  ;;  %s228_s28 = scalar_lea.vmem [#allocation6], %s607_s25 }
  0x31   : > { %860 = dma.done.wait (%p961_p4), %s225_s30, 128  }
  0x32   : > { %862 = vsyncadd (%p961_p4), %s225_s30, 4294967168 }
  0x33   : > { %864 = dma.done.wait (%p57_p1), [#allocation7], 512  }
  0x34   : > { %866 = vsyncadd (%p57_p1), [#allocation7], 4294966784  ;;  %vm267_vm0 = vcmask 261120   ;;  %v273_v0 = vld [vmem:[#allocation8 + $0x18] sm:$0xff]  ;;  %v272_v1 = vld [vmem:[#allocation8 + $0x10] sm:$0xff]  ;;  %s261_s18 = scalar_lea.vmem [#allocation9], %s607_s25 }
  0x35   : > { %610 = vmatpush.xpose.msk.msra.mxu0 %vm267_vm0, %v273_v0  ;;  %v271_v2 = vld [vmem:[#allocation8 + $0x8] sm:$0xff]  ;;  %v270_v3 = vld [vmem:[#allocation8] sm:$0xff]  ;;  %v269_v4 = vld [vmem:[%s228_s28] sm:$0xff]  ;;  %s618_s20 = sshll.u32 %s885_s15, 3  ;;  %s479_s19 = sshll.u32 %s261_s18, 4  ;;  %s480_s19 = int_to_ptr.vmem [resolvable:$true] %s479_s19 }
  0x36   : > { %v316_v5 = vld [vmem:[%s1033_s27 + $0x30] sm:$0xff]  ;;  %v314_v6 = vld [vmem:[%s1033_s27 + $0x20] sm:$0xff]  ;;  %v317_v9 = vld [vmem:[%s1033_s27 + $0x38] sm:$0xff]  ;;  %s477_s7 = scalar_lea.hbm %s1112_s3, %s618_s20  ;;  %s467_s9 = scalar_lea.sflag [#allocation5], %s1029_s2 }
  0x37   : > { %335 = vmatpush.msra.mxu2 %v316_v5  ;;  %435 = vmatpush.xpose.msra.mxu3 %v316_v5  ;;  %v312_v7 = vld [vmem:[%s1033_s27 + $0x10] sm:$0xff]  ;;  %v310_v8 = vld [vmem:[%s1033_s27] sm:$0xff]  ;;  %v315_v10 = vld [vmem:[%s1033_s27 + $0x28] sm:$0xff]  ;;  %v900_v5 = vmov 0.0   ;;  %s481_s11 = sshll.u32 %s477_s7, 4  ;;  %s823_s5 = scalar_lea.hbm %s1112_s3, 16  ;;  %s482_s11 = int_to_ptr.hbm [resolvable:$true] %s481_s11 }
  0x38   : > { %v313_v11 = vld [vmem:[%s1033_s27 + $0x18] sm:$0xff]  ;;  %455 = vmatpush.xpose.msra.mxu1 %v317_v9  ;;  %v311_v12 = vld [vmem:[%s1033_s27 + $0x8] sm:$0xff]  ;;  %268 = vst.msk [vmem:[%s261_s18] sm:$0xff] %vm267_vm0, %v900_v5  ;;  %s817_s22 = sshra.s32 %s482_s11, 4  ;;  %s818_s22 = int_to_ptr.hbm [resolvable:$true] %s817_s22 }
  0x39   : > { %611 = vmatpush.xpose.msk.msra.mxu0 %vm267_vm0, %v272_v1  ;;  %336 = vmatpush.msra.mxu2 %v314_v6  ;;  %s819_s15 = scalar_lea.hbm %s818_s22, 8  ;;  %p824_p10 = scmp.lt.s32.totalorder %s818_s22, %s1112_s3 }
  0x3a   : > { %p820_p1 = scmp.ne.s32.totalorder %s818_s22, %s819_s15  ;;  %p825_p12 = scmp.lt.s32.totalorder %s823_s5, %s819_s15 }
  0x3b   : > { %337 = vmatpush.msra.mxu2 %v312_v7  ;;  %436 = vmatpush.xpose.msra.mxu3 %v314_v6 }
  0x3c   : > { %456 = vmatpush.xpose.msra.mxu1 %v315_v10  ;;  %p821_p4 = pnand %p820_p1, %p996_p5  ;;  %p826_p13 = por %p825_p12, %p824_p10 }
  0x3d   : > { %612 = vmatpush.xpose.msk.msra.mxu0 %vm267_vm0, %v271_v2  ;;  %338 = vmatpush.msra.mxu2 %v310_v8 }
  0x3e   : > { %p822_p8 = pneg %p821_p4 }
  0x3f   : > { %355 = vmatpush.msrb.mxu2 %v317_v9  ;;  %437 = vmatpush.xpose.msra.mxu3 %v312_v7 }
  0x40   : > { %457 = vmatpush.xpose.msra.mxu1 %v313_v11  ;;  %p827_p0 = pnand %p826_p13, %p822_p8 }
  0x41   : > { %613 = vmatpush.xpose.msk.msra.mxu0 %vm267_vm0, %v270_v3  ;;  %356 = vmatpush.msrb.mxu2 %v315_v10 }
  0x43   : > { %357 = vmatpush.msrb.mxu2 %v313_v11  ;;  %438 = vmatpush.xpose.msra.mxu3 %v310_v8  ;;  %v463_v8 = vld [vmem:[%s261_s18] sm:$0xff] }
  0x44   : > { %614 = vmatmul.msk.f32.vlgmr.msra.gmra.mxu0 %vm267_vm0, %v269_v4  ;;  %458 = vmatpush.xpose.msra.mxu1 %v311_v12 }
  0x45   : > { %358 = vmatpush.msrb.mxu2 %v311_v12 }
  0xc1   : > { %v306_v13 = vpop.f32.mrf.mxu0 }
  0xc2   : > { %309 = vst.msk [vmem:[#allocation2] sm:$0xff] %vm267_vm0, %v306_v13 }
  0xc9   : > { %v318_v14 = vld [vmem:[#allocation2] sm:$0xff] }
  0xca   : > { %615 = vmatmul.msk.f32.vlgmr.msra.gmra.mxu2 %vm267_vm0, %v318_v14 }
  0xd2   : > { %616 = vmatmul.msk.f32.vlgmr.msrb.gmra.mxu2 %vm267_vm0, %v318_v14 }
 0x14d   : > { %v340_v15 = vpop.f32.mrf.mxu2 }
 0x14e   : > { %v363_v16 = vrot.slane %v340_v15, 4 }
 0x150   : > { %v364_v17 = vmax.f32 %v340_v15, %v363_v16 }
 0x152   : > { %v365_v18 = vrot.slane %v364_v17, 2 }
 0x154   : > { %v366_v19 = vmax.f32 %v364_v17, %v365_v18 }
 0x155   : > { %v360_v20 = vpop.f32.mrf.mxu2 }
 0x156   : > { %v367_v21 = vrot.slane %v366_v19, 1  ;;  %v369_v22 = vrot.slane %v360_v20, 4 }
 0x158   : > { %v368_v23 = vmax.f32 %v366_v19, %v367_v21  ;;  %v370_v24 = vmax.f32 %v360_v20, %v369_v22 }
 0x15a   : > { %v375_v25 = vsub.f32 %v340_v15, %v368_v23  ;;  %v371_v26 = vrot.slane %v370_v24, 2 }
 0x15c   : > { %v377_v27 = vmul.f32 1.442695, %v375_v25  ;;  %v372_v28 = vmax.f32 %v370_v24, %v371_v26 }
 0x15e   : > { %705 = vpow2.f32 %v377_v27  ;;  %v373_v29 = vrot.slane %v372_v28, 1 }
 0x160   : > { %v374_v30 = vmax.f32 %v372_v28, %v373_v29 }
 0x162   : > { %v376_v31 = vsub.f32 %v360_v20, %v374_v30 }
 0x164   : > { %v706_v32 = vpop.eup %705  ;;  %v379_v33 = vmul.f32 1.442695, %v376_v31 }
 0x165   : > { %v381_v34 = vrot.slane %v706_v32, 4 }
 0x166   : > { %707 = vpow2.f32 %v379_v33 }
 0x167   : > { %v382_v35 = vadd.f32 %v706_v32, %v381_v34 }
 0x169   : > { %v383_v36 = vrot.slane %v382_v35, 2 }
 0x16b   : > { %v384_v37 = vadd.f32 %v383_v36, %v382_v35 }
 0x16c   : > { %v708_v38 = vpop.eup %707 }
 0x16d   : > { %v387_v39 = vrot.slane %v708_v38, 4  ;;  %v385_v40 = vrot.slane %v384_v37, 1 }
 0x16f   : > { %v388_v41 = vadd.f32 %v708_v38, %v387_v39  ;;  %v386_v42 = vadd.f32 %v385_v40, %v384_v37 }
 0x171   : > { %v389_v43 = vrot.slane %v388_v41, 2  ;;  %709 = vrcp.f32 %v386_v42  ;;  %v404_v50 = vand.u32 2147483648, %v386_v42  ;;  %v402_v52 = vand.u32 2147483647, %v386_v42 }
 0x172   : > { %vm398_vm2 = vweird.f32 %v386_v42 }
 0x173   : > { %v390_v44 = vadd.f32 %v389_v43, %v388_v41  ;;  %v405_v55 = vor.u32 1.1754944e-38, %v404_v50  ;;  %vm403_vm4 = vcmp.eq.f32.partialorder %v402_v52, 8.507059e+37 }
 0x175   : > { %v391_v45 = vrot.slane %v390_v44, 1 }
 0x177   : > { %v710_v46 = vpop.eup %709  ;;  %v392_v47 = vadd.f32 %v391_v45, %v390_v44 }
 0x178   : > { %v394_v48 = vmul.f32 %v710_v46, %v386_v42  ;;  %vm399_vm1 = vweird.f32 %v710_v46 }
 0x179   : > { %711 = vrcp.f32 %v392_v47  ;;  %vm400_vm3 = vmor %vm398_vm2, %vm399_vm1  ;;  %v419_v61 = vand.u32 2147483648, %v392_v47  ;;  %v417_v63 = vand.u32 2147483647, %v392_v47  ;;  %vm413_vm6 = vweird.f32 %v392_v47 }
 0x17a   : > { %v395_v49 = vsub.f32 1.0, %v394_v48 }
 0x17b   : > { %v420_v1 = vor.u32 1.1754944e-38, %v419_v61  ;;  %vm418_vm8 = vcmp.eq.f32.partialorder %v417_v63, 8.507059e+37 }
 0x17c   : > { %v396_v51 = vmul.f32 %v710_v46, %v395_v49 }
 0x17e   : > { %v397_v53 = vadd.f32 %v710_v46, %v396_v51 }
 0x17f   : > { %v712_v54 = vpop.eup %711 }
 0x180   : > { %v401_v56 = vsel %vm400_vm3, %v710_v46, %v397_v53  ;;  %v409_v57 = vmul.f32 %v712_v54, %v392_v47  ;;  %vm414_vm5 = vweird.f32 %v712_v54 }
 0x181   : > { %v406_v58 = vsel %vm403_vm4, %v405_v55, %v401_v56  ;;  %vm415_vm7 = vmor %vm413_vm6, %vm414_vm5 }
 0x182   : > { %v407_v59 = vmul.f32 %v706_v32, %v406_v58  ;;  %v410_v60 = vsub.f32 1.0, %v409_v57 }
 0x184   : > { %439 = vmatmul.f32.vlgmr.msra.gmra.mxu3 %v407_v59  ;;  %v411_v62 = vmul.f32 %v712_v54, %v410_v60 }
 0x186   : > { %v412_v0 = vadd.f32 %v712_v54, %v411_v62 }
 0x188   : > { %v416_v2 = vsel %vm415_vm7, %v712_v54, %v412_v0 }
 0x189   : > { %v421_v3 = vsel %vm418_vm8, %v420_v1, %v416_v2 }
 0x18a   : > { %v422_v4 = vmul.f32 %v708_v38, %v421_v3 }
 0x18c   : > { %459 = vmatmul.f32.vlgmr.msra.gmra.mxu1 %v422_v4 }
 0x207   : > { %v440_v6 = vpop.f32.mrf.mxu3 }
 0x209   : > { %v460_v7 = vpop.f32.mrf.mxu1 }
 0x20a   : > { %v461_v9 = vadd.f32 %v460_v7, %v440_v6 }
 0x20c   : > { %v464_v10 = vadd.f32 %v463_v8, %v461_v9 }
 0x20e   : > { %465 = vst.msk [vmem:[%s261_s18] sm:$0xff] %vm267_vm0, %v464_v10 }
 0x20f   : > { %830 = shalt.err (!%p827_p0)
}
 0x210   : > { %630 = dma.vmem_to_hbm [thread:$0]  (%p996_p5), %s480_s19, 128, %s482_s11, %s467_s9  }
 0x211 PF: > { %s493_s2 = sand.u32 1, %s873_s12   ;;  %p644_p3 = pnand %p599_p11, %p966_p6 }
 0x212   : > { %s494_s27 = scalar_lea.sflag [#allocation5], %s493_s2 }
 0x213   : > { %p645_p7 = pneg %p644_p3 }
 0x215   : > { %868 = dma.done.wait (%p645_p7), %s494_s27, 128  }
 0x216   : > { %870 = vsyncadd (%p645_p7), %s494_s27, 4294967168  ;;  %s22_s17 = sadd.s32 1, %s893_s17   ;;  %s1125_s6 = sld [smem:[#allocation14_spill]] }
 0x217   : > { %p19_p9 = scmp.ge.s32.totalorder %s22_s17, 4   ;;  %s1126_s12 = smov %s877_s13 }
 0x218   : > { %s1127_s13 = smov %s881_s14  ;;  %s1128_s14 = smov %s1005_s10 }
 0x219   : > { %s1129_s15 = smov %s889_s16  ;;  %21 = sbr.rel (!%p19_p9) target bundleno = 11 (0xb), region = 98 }
 0x21c   : > { %s1130_s16 = smov %s1125_s6 }
 0x21e   :  { %500 = vsyncpa [#allocation4], 1 }
 0x21f   :  { %502 = vsyncpa [#allocation4 + $0x1], 1 }
 0x220   :  { %503 = vsyncpa [#allocation7], 1 }
 0x221   :  { %505 = vsyncpa [#allocation7 + $0x1], 1 }
 0x222   :  { %506 = vsyncpa [#allocation5], 1 }
 0x223   :  { %508 = vsyncpa [#allocation5 + $0x1], 1 }

</bundles_post_ra>
